<compile_context>
chip_gen: v7x
topology: tpu7x:2x2x1
jax: 0.10.0
libtpu: 0.0.40
codegen_flags: <defaults>
</compile_context>

<pallas_src>
import functools

import jax
import jax.numpy as jnp
from jax.experimental import pallas as pl
from jax.experimental.pallas import tpu as pltpu


LANE = 128          # lane width
SUBLANE_BF16 = 16   # sublane quantum for bf16 rows
MAX_TILE_B = 1024   # batch tile cap (sized for v7x's 32 MiB scoped VMEM)


def _round_up(n: int, m: int) -> int:
    return ((n + m - 1) // m) * m


# ----------------------------------------------------------------------------
# Pallas kernel: fused 3-layer MLP (BN pre-folded into weights/biases)
# ----------------------------------------------------------------------------
def strategy_net_kernel(
    x_ref,             # (TILE_B, D_in_pad)  bf16
    w1_ref, b1_ref,    # (D_in_pad, 512) bf16, (1, 512) f32
    w2_ref, b2_ref,    # (512, 256)      bf16, (1, 256) f32
    w3_ref, b3_ref,    # (256, A_pad)    bf16, (1, A_pad) f32
    o_ref,             # (TILE_B, A_pad) f32
):
    x = x_ref[...]  # bf16 operands feed the MXU directly

    # Layer 1: Linear (BN folded) -> ReLU       (Dropout = identity, eval mode)
    h1 = jnp.dot(x, w1_ref[...], preferred_element_type=jnp.float32)
    h1 = jnp.maximum(h1 + b1_ref[...], 0.0)          # f32 elementwise (VPU)

    # Layer 2: Linear (BN folded) -> ReLU
    h2 = jnp.dot(h1.astype(jnp.bfloat16), w2_ref[...],
                 preferred_element_type=jnp.float32)
    h2 = jnp.maximum(h2 + b2_ref[...], 0.0)

    # Layer 3: Linear (logits over actions, lane-padded to A_pad)
    out = jnp.dot(h2.astype(jnp.bfloat16), w3_ref[...],
                  preferred_element_type=jnp.float32)
    o_ref[...] = out + b3_ref[...]


# ----------------------------------------------------------------------------
# Parameter construction (mirrors nn.Module __init__, kept in f32)
# ----------------------------------------------------------------------------
def init_params(key, input_size: int, num_actions: int):
    dims = [(input_size, 512), (512, 256), (256, num_actions)]
    keys = jax.random.split(key, 6)
    params = {}
    for i, (fan_in, fan_out) in enumerate(dims):
        # kaiming_normal_(mode='fan_in', nonlinearity='relu'): std = sqrt(2/fan_in)
        std = (2.0 / fan_in) ** 0.5
        w = std * jax.random.normal(keys[2 * i], (fan_in, fan_out), jnp.float32)
        # nn.Linear default bias init: U(-1/sqrt(fan_in), 1/sqrt(fan_in))
        bound = 1.0 / (fan_in ** 0.5)
        b = jax.random.uniform(keys[2 * i + 1], (1, fan_out), jnp.float32,
                               -bound, bound)
        params[f"w{i+1}"] = w
        params[f"b{i+1}"] = b

    # BatchNorm1d params at init: gamma=1, beta=0, running_mean=0, running_var=1
    for i, n in enumerate((512, 256)):
        params[f"gamma{i+1}"] = jnp.ones((1, n), jnp.float32)
        params[f"beta{i+1}"] = jnp.zeros((1, n), jnp.float32)
        params[f"mean{i+1}"] = jnp.zeros((1, n), jnp.float32)
        params[f"var{i+1}"] = jnp.ones((1, n), jnp.float32)
    return params


# ----------------------------------------------------------------------------
# Fold BN into weights, pad to lane-dense shapes, cast weights to bf16
# ----------------------------------------------------------------------------
def prepare_kernel_params(params, input_size: int, num_actions: int,
                          eps: float = 1e-5):
    d_in_pad = _round_up(input_size, LANE)
    a_pad = _round_up(num_actions, LANE)

    def fold(w, b, gamma, beta, mean, var):
        s = gamma / jnp.sqrt(var + eps)          # (1, out)
        t = beta - mean * s
        return w * s, b * s + t                  # column-wise fold

    w1, b1 = fold(params["w1"], params["b1"], params["gamma1"],
                  params["beta1"], params["mean1"], params["var1"])
    w2, b2 = fold(params["w2"], params["b2"], params["gamma2"],
                  params["beta2"], params["mean2"], params["var2"])
    w3, b3 = params["w3"], params["b3"]

    # Zero-pad w1 rows (input features) and w3/b3 columns (actions) to lanes.
    w1 = jnp.pad(w1, ((0, d_in_pad - input_size), (0, 0)))
    w3 = jnp.pad(w3, ((0, 0), (0, a_pad - num_actions)))
    b3 = jnp.pad(b3, ((0, 0), (0, a_pad - num_actions)))

    return {
        "w1": w1.astype(jnp.bfloat16), "b1": b1,
        "w2": w2.astype(jnp.bfloat16), "b2": b2,
        "w3": w3.astype(jnp.bfloat16), "b3": b3,
    }


# ----------------------------------------------------------------------------
# Wrapper: batch-tiled pallas_call with weight-resident BlockSpecs
# ----------------------------------------------------------------------------
@functools.partial(jax.jit, static_argnames=("input_size", "num_actions"))
def strategy_net_forward(x, kparams, input_size: int, num_actions: int):
    batch = x.shape[0]
    d_in_pad = kparams["w1"].shape[0]
    a_pad = kparams["w3"].shape[1]

    # Batch tile: largest that fits comfortably in v7x scoped VMEM, rounded to
    # the bf16 sublane quantum; small batches just round up to one tile.
    tile_b = MAX_TILE_B if batch >= MAX_TILE_B else _round_up(batch, SUBLANE_BF16)
    b_pad = _round_up(batch, tile_b)

    # Pad input to (b_pad, d_in_pad) and cast to bf16 (halves input DMA bytes).
    x_p = jnp.pad(x, ((0, b_pad - batch), (0, d_in_pad - input_size)))
    x_p = x_p.astype(jnp.bfloat16)

    grid = (b_pad // tile_b,)
    const = lambda i: (0, 0)   # weights/biases: VMEM-resident across grid steps

    out_pad = pl.pallas_call(
        strategy_net_kernel,
        out_shape=jax.ShapeDtypeStruct((b_pad, a_pad), jnp.float32),
        grid=grid,
        in_specs=[
            pl.BlockSpec((tile_b, d_in_pad), lambda i: (i, 0)),   # x tile
            pl.BlockSpec((d_in_pad, 512), const),                 # w1
            pl.BlockSpec((1, 512), const),                        # b1
            pl.BlockSpec((512, 256), const),                      # w2
            pl.BlockSpec((1, 256), const),                        # b2
            pl.BlockSpec((256, a_pad), const),                    # w3
            pl.BlockSpec((1, a_pad), const),                      # b3
        ],
        out_specs=pl.BlockSpec((tile_b, a_pad), lambda i: (i, 0)),
        compiler_params=pltpu.CompilerParams(
            dimension_semantics=("parallel",),   # shard batch tiles across TCs
        ),
    )(
        x_p,
        kparams["w1"], kparams["b1"],
        kparams["w2"], kparams["b2"],
        kparams["w3"], kparams["b3"],
    )
    return out_pad[:batch, :num_actions]


# ----------------------------------------------------------------------------
# Pure-JAX f32 reference (unfolded BN, inference mode) for correctness check
# ----------------------------------------------------------------------------
def strategy_net_ref(x, params, eps: float = 1e-5):
    def bn(h, i):
        s = params[f"gamma{i}"] / jnp.sqrt(params[f"var{i}"] + eps)
        return (h - params[f"mean{i}"]) * s + params[f"beta{i}"]

    h1 = jnp.maximum(bn(x @ params["w1"] + params["b1"], 1), 0.0)
    h2 = jnp.maximum(bn(h1 @ params["w2"] + params["b2"], 2), 0.0)
    return h2 @ params["w3"] + params["b3"]


if __name__ == "__main__":
    input_size = 32
    num_actions = 8
    batch = 2

    key = jax.random.PRNGKey(0)
    key_x, key_p = jax.random.split(key)
    x = jax.random.normal(key_x, (batch, input_size), jnp.float32)

    params = init_params(key_p, input_size, num_actions)
    kparams = prepare_kernel_params(params, input_size, num_actions)

    out = strategy_net_forward(x, kparams, input_size, num_actions)
    out = jax.block_until_ready(out)

    ref = strategy_net_ref(x, params)
    assert out.shape == (batch, num_actions), out.shape
    # bf16 weights -> loosened tolerance vs f32 reference (per review note).
    assert jnp.allclose(out, ref, atol=5e-2, rtol=5e-2), "mismatch vs reference"

    print("KERNEL_OK")
</pallas_src>

<mosaic_0001>
module attributes {stable_mosaic.version = 11 : i64} {
  func.func @strategy_net_kernel(%arg0: i32, %arg1: memref<16x128xbf16, #tpu.memory_space<vmem>>, %arg2: memref<128x512xbf16, #tpu.memory_space<vmem>>, %arg3: memref<1x512xf32, #tpu.memory_space<vmem>>, %arg4: memref<512x256xbf16, #tpu.memory_space<vmem>>, %arg5: memref<1x256xf32, #tpu.memory_space<vmem>>, %arg6: memref<256x128xbf16, #tpu.memory_space<vmem>>, %arg7: memref<1x128xf32, #tpu.memory_space<vmem>>, %arg8: memref<16x128xf32, #tpu.memory_space<vmem>>) attributes {dimension_semantics = [#tpu.dimension_semantics<parallel>], iteration_bounds = array<i64: 1>, scalar_prefetch = 0 : i64, scratch_operands = 0 : i64, tpu.core_type = #tpu.core_type<tc>, window_params = [{transform_indices = @transform_0, window_bounds = array<i64: 16, 128>}, {pipeline_mode = #tpu.pipeline_mode<synchronous>, transform_indices = @transform_1, window_bounds = array<i64: 128, 512>}, {pipeline_mode = #tpu.pipeline_mode<synchronous>, transform_indices = @transform_2, window_bounds = array<i64: 1, 512>}, {pipeline_mode = #tpu.pipeline_mode<synchronous>, transform_indices = @transform_3, window_bounds = array<i64: 512, 256>}, {pipeline_mode = #tpu.pipeline_mode<synchronous>, transform_indices = @transform_4, window_bounds = array<i64: 1, 256>}, {pipeline_mode = #tpu.pipeline_mode<synchronous>, transform_indices = @transform_5, window_bounds = array<i64: 256, 128>}, {pipeline_mode = #tpu.pipeline_mode<synchronous>, transform_indices = @transform_6, window_bounds = array<i64: 1, 128>}, {transform_indices = @transform_7, window_bounds = array<i64: 16, 128>}]} {
    %c0 = arith.constant 0 : index
    %c0_0 = arith.constant 0 : index
    %0 = vector.load %arg1[%c0, %c0_0] : memref<16x128xbf16, #tpu.memory_space<vmem>>, vector<16x128xbf16>
    %c0_1 = arith.constant 0 : index
    %c0_2 = arith.constant 0 : index
    %1 = vector.load %arg2[%c0_1, %c0_2] : memref<128x512xbf16, #tpu.memory_space<vmem>>, vector<128x512xbf16>
    %cst = arith.constant dense<0.000000e+00> : vector<16x512xf32>
    %2 = tpu.matmul %0, %1, %cst {dimension_numbers = #tpu.dot_dimension_numbers<[1], [0], [0], [1], [0, 0, 1, 1], [], []>} : vector<16x128xbf16>, vector<128x512xbf16>, vector<16x512xf32> -> vector<16x512xf32>
    %c0_3 = arith.constant 0 : index
    %c0_4 = arith.constant 0 : index
    %3 = vector.load %arg3[%c0_3, %c0_4] : memref<1x512xf32, #tpu.memory_space<vmem>>, vector<1x512xf32>
    %4 = vector.broadcast %3 : vector<1x512xf32> to vector<16x512xf32>
    %5 = arith.addf %2, %4 : vector<16x512xf32>
    %cst_5 = arith.constant 0.000000e+00 : f32
    %6 = vector.broadcast %cst_5 : f32 to vector<16x512xf32>
    %7 = arith.maximumf %5, %6 : vector<16x512xf32>
    %8 = arith.truncf %7 : vector<16x512xf32> to vector<16x512xbf16>
    %c0_6 = arith.constant 0 : index
    %c0_7 = arith.constant 0 : index
    %9 = vector.load %arg4[%c0_6, %c0_7] : memref<512x256xbf16, #tpu.memory_space<vmem>>, vector<512x256xbf16>
    %cst_8 = arith.constant dense<0.000000e+00> : vector<16x256xf32>
    %10 = tpu.matmul %8, %9, %cst_8 {dimension_numbers = #tpu.dot_dimension_numbers<[1], [0], [0], [1], [0, 0, 1, 1], [], []>} : vector<16x512xbf16>, vector<512x256xbf16>, vector<16x256xf32> -> vector<16x256xf32>
    %c0_9 = arith.constant 0 : index
    %c0_10 = arith.constant 0 : index
    %11 = vector.load %arg5[%c0_9, %c0_10] : memref<1x256xf32, #tpu.memory_space<vmem>>, vector<1x256xf32>
    %12 = vector.broadcast %11 : vector<1x256xf32> to vector<16x256xf32>
    %13 = arith.addf %10, %12 : vector<16x256xf32>
    %cst_11 = arith.constant 0.000000e+00 : f32
    %14 = vector.broadcast %cst_11 : f32 to vector<16x256xf32>
    %15 = arith.maximumf %13, %14 : vector<16x256xf32>
    %16 = arith.truncf %15 : vector<16x256xf32> to vector<16x256xbf16>
    %c0_12 = arith.constant 0 : index
    %c0_13 = arith.constant 0 : index
    %17 = vector.load %arg6[%c0_12, %c0_13] : memref<256x128xbf16, #tpu.memory_space<vmem>>, vector<256x128xbf16>
    %cst_14 = arith.constant dense<0.000000e+00> : vector<16x128xf32>
    %18 = tpu.matmul %16, %17, %cst_14 {dimension_numbers = #tpu.dot_dimension_numbers<[1], [0], [0], [1], [0, 0, 1, 1], [], []>} : vector<16x256xbf16>, vector<256x128xbf16>, vector<16x128xf32> -> vector<16x128xf32>
    %c0_15 = arith.constant 0 : index
    %c0_16 = arith.constant 0 : index
    %19 = vector.load %arg7[%c0_15, %c0_16] : memref<1x128xf32, #tpu.memory_space<vmem>>, vector<1x128xf32>
    %20 = vector.broadcast %19 : vector<1x128xf32> to vector<16x128xf32>
    %21 = arith.addf %18, %20 : vector<16x128xf32>
    %c0_17 = arith.constant 0 : index
    %c0_18 = arith.constant 0 : index
    %22 = vector.load %arg8[%c0_17, %c0_18] : memref<16x128xf32, #tpu.memory_space<vmem>>, vector<16x128xf32>
    tpu.vector_store %arg8[%c0_17, %c0_18], %21 {strides = array<i32>} : memref<16x128xf32, #tpu.memory_space<vmem>>, vector<16x128xf32>,
    return
  }
  func.func @transform_0(%arg0: i32) -> (i32, i32) {
    %c0_i32 = arith.constant 0 : i32
    %c0_i32_0 = arith.constant 0 : i32
    return %arg0, %c0_i32 : i32, i32
  }
  func.func @transform_1(%arg0: i32) -> (i32, i32) {
    %c0_i32 = arith.constant 0 : i32
    %c0_i32_0 = arith.constant 0 : i32
    %c0_i32_1 = arith.constant 0 : i32
    return %c0_i32, %c0_i32_0 : i32, i32
  }
  func.func @transform_2(%arg0: i32) -> (i32, i32) {
    %c0_i32 = arith.constant 0 : i32
    %c0_i32_0 = arith.constant 0 : i32
    %c0_i32_1 = arith.constant 0 : i32
    return %c0_i32, %c0_i32_0 : i32, i32
  }
  func.func @transform_3(%arg0: i32) -> (i32, i32) {
    %c0_i32 = arith.constant 0 : i32
    %c0_i32_0 = arith.constant 0 : i32
    %c0_i32_1 = arith.constant 0 : i32
    return %c0_i32, %c0_i32_0 : i32, i32
  }
  func.func @transform_4(%arg0: i32) -> (i32, i32) {
    %c0_i32 = arith.constant 0 : i32
    %c0_i32_0 = arith.constant 0 : i32
    %c0_i32_1 = arith.constant 0 : i32
    return %c0_i32, %c0_i32_0 : i32, i32
  }
  func.func @transform_5(%arg0: i32) -> (i32, i32) {
    %c0_i32 = arith.constant 0 : i32
    %c0_i32_0 = arith.constant 0 : i32
    %c0_i32_1 = arith.constant 0 : i32
    return %c0_i32, %c0_i32_0 : i32, i32
  }
  func.func @transform_6(%arg0: i32) -> (i32, i32) {
    %c0_i32 = arith.constant 0 : i32
    %c0_i32_0 = arith.constant 0 : i32
    %c0_i32_1 = arith.constant 0 : i32
    return %c0_i32, %c0_i32_0 : i32, i32
  }
  func.func @transform_7(%arg0: i32) -> (i32, i32) {
    %c0_i32 = arith.constant 0 : i32
    %c0_i32_0 = arith.constant 0 : i32
    return %arg0, %c0_i32 : i32, i32
  }
}

</mosaic_0001>

<bundles_post_ra>
// kernel: strategy_net_forward.1
= control target key start
LH: loop header
LB: loop body
LE: loop exit
PB: predicated region body
PF: predicated region fallthrough
CT: control target
= control target key end

     0   :  { %12 = vsyncpa [#allocation3], 0  ;;  %s1567_s0 = inlined_call_operand.vmem [shape: bf16[16,128], index: 0, kind: input, shape index: {}]   ;;  %s1568_s1 = inlined_call_operand.hbm [shape: bf16[128,512], index: 1, kind: input, shape index: {}]   ;;  %s1569_s2 = inlined_call_operand.vmem [shape: f32[1,512], index: 2, kind: input, shape index: {}]   ;;  %s1570_s3 = inlined_call_operand.hbm [shape: bf16[512,256], index: 3, kind: input, shape index: {}]   ;;  %s1571_s4 = inlined_call_operand.vmem [shape: f32[1,256], index: 4, kind: input, shape index: {}]   ;;  %s1572_s5 = inlined_call_operand.hbm [shape: bf16[256,128], index: 5, kind: input, shape index: {}]   ;;  %s1573_s6 = inlined_call_operand.vmem [shape: f32[1,128], index: 6, kind: input, shape index: {}]   ;;  %s1574_s7 = inlined_call_operand.vmem [shape: f32[16,128], index: 7, kind: output, shape index: {}]  }
   0x1   :  { %13 = vsyncpa [#allocation5], 0  ;;  %s1445_s24 = smov [#allocation4]   ;;  %s1375_s28 = scalar_lea.hbm %s1570_s3, 8192 }
   0x2   :  { %s35_s25 = sshll.u32 %s1445_s24, 4  ;;  %p1376_p0 = scmp.ne.s32.totalorder %s1570_s3, %s1375_s28  ;;  %s36_s25 = int_to_ptr.vmem [resolvable:$true] %s35_s25 }
   0x3   :  { %p1379_p1 = scmp.lt.u32.totalorder %s1375_s28, %s1570_s3 }
   0x5   :  { %p1381_p2 = pnand %p1379_p1, %p1376_p0 }
   0x7   :  { %1384 = shalt.err (!%p1381_p2)
}
   0x8   :  { %s1385_s10 = scalar_lea.vmem %s36_s25, 8192  ;;  %p1390_p4 = scmp.lt.s32.totalorder %s36_s25, %s36_s25 }
   0x9   :  { %p1386_p3 = scmp.ne.s32.totalorder %s36_s25, %s1385_s10  ;;  %p1391_p5 = scmp.lt.s32.totalorder %s1385_s10, %s1385_s10 }
   0xb   :  { %p1392_p6 = por %p1391_p5, %p1390_p4 }
   0xd   :  { %p1393_p7 = pnand %p1392_p6, %p1386_p3 }
   0xf   :  { %1396 = shalt.err (!%p1393_p7)
}
  0x10   :  { %s1446_s11 = smov 128   ;;  %s1447_s12 = smov 8  }
  0x11   :  { %41 = dma.hbm_to_vmem [thread:$0]  %s1570_s3, 8192, %s36_s25, [#allocation5], %s1446_s11, %s1446_s11, %s1447_s12  }
  0x12   :  { %s1448_s15 = smov [#allocation2]   ;;  %s1397_s19 = scalar_lea.hbm %s1568_s1, 4096 }
  0x13   :  { %s21_s16 = sshll.u32 %s1448_s15, 4  ;;  %p1398_p8 = scmp.ne.s32.totalorder %s1568_s1, %s1397_s19  ;;  %s22_s16 = int_to_ptr.vmem [resolvable:$true] %s21_s16 }
  0x14   :  { %p1401_p9 = scmp.lt.u32.totalorder %s1397_s19, %s1568_s1 }
  0x16   :  { %p1403_p10 = pnand %p1401_p9, %p1398_p8 }
  0x18   :  { %1406 = shalt.err (!%p1403_p10)
}
  0x19   :  { %s1407_s24 = scalar_lea.vmem %s22_s16, 4096  ;;  %p1412_p12 = scmp.lt.s32.totalorder %s22_s16, %s22_s16 }
  0x1a   :  { %p1408_p11 = scmp.ne.s32.totalorder %s22_s16, %s1407_s24  ;;  %p1413_p13 = scmp.lt.s32.totalorder %s1407_s24, %s1407_s24 }
  0x1c   :  { %p1414_p0 = por %p1413_p13, %p1412_p12 }
  0x1e   :  { %p1415_p1 = pnand %p1414_p0, %p1408_p11 }
  0x20   :  { %1418 = shalt.err (!%p1415_p1)
}
  0x21   :  { %s1449_s3 = smov 256   ;;  %s1450_s25 = smov 16  }
  0x22   :  { %27 = dma.hbm_to_vmem [thread:$0]  %s1568_s1, 4096, %s22_s16, [#allocation3], %s1449_s3, %s1449_s3, %s1450_s25  }
  0x23   :  { %s1451_s28 = smov [#allocation6]   ;;  %s1419_s9 = scalar_lea.hbm %s1572_s5, 2048 }
  0x24   :  { %s49_s29 = sshll.u32 %s1451_s28, 4  ;;  %p1420_p2 = scmp.ne.s32.totalorder %s1572_s5, %s1419_s9  ;;  %s50_s29 = int_to_ptr.vmem [resolvable:$true] %s49_s29 }
  0x25   :  { %p1423_p3 = scmp.lt.u32.totalorder %s1419_s9, %s1572_s5 }
  0x27   :  { %p1425_p4 = pnand %p1423_p3, %p1420_p2 }
  0x29   :  { %1428 = shalt.err (!%p1425_p4)
}
  0x2a   :  { %s1429_s14 = scalar_lea.vmem %s50_s29, 2048  ;;  %p1434_p6 = scmp.lt.s32.totalorder %s50_s29, %s50_s29 }
  0x2b   :  { %p1430_p5 = scmp.ne.s32.totalorder %s50_s29, %s1429_s14  ;;  %p1435_p7 = scmp.lt.s32.totalorder %s1429_s14, %s1429_s14 }
  0x2d   :  { %p1436_p8 = por %p1435_p7, %p1434_p6 }
  0x2f   :  { %p1437_p9 = pnand %p1436_p8, %p1430_p5 }
  0x31   :  { %1440 = shalt.err (!%p1437_p9)
}
  0x32   :  { %s1452_s1 = smov 64   ;;  %s1453_s15 = smov 4  }
  0x33   :  { %55 = dma.hbm_to_vmem [thread:$0]  %s1572_s5, 2048, %s50_s29, [#allocation5], %s1452_s1, %s1452_s1, %s1453_s15  }
  0x34   :  { %1441 = dma.done.wait [#allocation3], 4096  }
  0x35   :  { %1442 = vsyncadd [#allocation3], 4294963200 }
  0x36   :  { %1443 = dma.done.wait [#allocation5], 10240  }
  0x37   :  { %1444 = vsyncadd [#allocation5], 4294957056  ;;  %v1454_v0 = vmov 0   ;;  %v1214_v1 = vld [vmem:[#allocation2 + $0x4] ss:$16 sps:$4 sm:$0xff]  }
  0x38   :  { %322 = vmatprep.mubr.bf16.mxu1 %v1454_v0  ;;  %v1216_v2 = vld [vmem:[#allocation2] ss:$16 sps:$4 sm:$0xff]   ;;  %290 = vmatprep.subr.bf16.mxu1 %v1214_v1  ;;  %v1217_v3 = vld [vmem:[#allocation2 + $0x24] ss:$16 sps:$4 sm:$0xff]   ;;  %v1241_v22 = vld [vmem:[#allocation2 + $0xc] ss:$16 sps:$4 sm:$0xff]  }
  0x39   :  { %291 = vmatpush1.bf16.msra.mxu1 %v1216_v2  ;;  %v1219_v4 = vld [vmem:[#allocation2 + $0x20] ss:$16 sps:$4 sm:$0xff]   ;;  %v1220_v5 = vld [vmem:[#allocation2 + $0x44] ss:$16 sps:$4 sm:$0xff]   ;;  %v1239_v25 = vld [vmem:[#allocation2 + $0x8] ss:$16 sps:$4 sm:$0xff]  }
  0x3a   :  { %292 = vmatprep.subr.bf16.mxu1 %v1217_v3  ;;  %v1222_v6 = vld [vmem:[#allocation2 + $0x40] ss:$16 sps:$4 sm:$0xff]   ;;  %v1223_v7 = vld [vmem:[#allocation2 + $0x64] ss:$16 sps:$4 sm:$0xff]   ;;  %v1244_v26 = vld [vmem:[#allocation2 + $0x2c] ss:$16 sps:$4 sm:$0xff]  }
  0x3b   :  { %v1225_v8 = vld [vmem:[#allocation2 + $0x60] ss:$16 sps:$4 sm:$0xff]   ;;  %v1226_v9 = vld [vmem:[#allocation2 + $0x84] ss:$16 sps:$4 sm:$0xff]   ;;  %v1242_v29 = vld [vmem:[#allocation2 + $0x28] ss:$16 sps:$4 sm:$0xff]  }
  0x3c   :  { %v1228_v10 = vld [vmem:[#allocation2 + $0x80] ss:$16 sps:$4 sm:$0xff]   ;;  %v1229_v11 = vld [vmem:[#allocation2 + $0xa4] ss:$16 sps:$4 sm:$0xff]   ;;  %v1247_v31 = vld [vmem:[#allocation2 + $0x4c] ss:$16 sps:$4 sm:$0xff]  }
  0x3d   :  { %293 = vmatpush1.bf16.msra.mxu1 %v1219_v4  ;;  %v1231_v12 = vld [vmem:[#allocation2 + $0xa0] ss:$16 sps:$4 sm:$0xff]   ;;  %v1232_v13 = vld [vmem:[#allocation2 + $0xc4] ss:$16 sps:$4 sm:$0xff]   ;;  %v1245_v33 = vld [vmem:[#allocation2 + $0x48] ss:$16 sps:$4 sm:$0xff]  }
  0x3e   :  { %294 = vmatprep.subr.bf16.mxu1 %v1220_v5  ;;  %v1234_v14 = vld [vmem:[#allocation2 + $0xc0] ss:$16 sps:$4 sm:$0xff]   ;;  %v1263_v15 = vld [vmem:[#allocation4 + $0x4] ss:$8 sps:$4 sm:$0xff]   ;;  %v1266_v18 = vld [vmem:[#allocation4 + $0x14] ss:$8 sps:$4 sm:$0xff]  }
  0x3f   :  { %v1265_v16 = vld [vmem:[#allocation4] ss:$8 sps:$4 sm:$0xff]   ;;  %v1235_v17 = vld [vmem:[#allocation2 + $0xe4] ss:$16 sps:$4 sm:$0xff]   ;;  %784 = vmatprep.subr.bf16.mxu0 %v1263_v15  ;;  %v1268_v19 = vld [vmem:[#allocation4 + $0x10] ss:$8 sps:$4 sm:$0xff]  }
  0x40   :  { %785 = vmatpush1.bf16.msra.mxu0 %v1265_v16  ;;  %v1237_v20 = vld [vmem:[#allocation2 + $0xe0] ss:$16 sps:$4 sm:$0xff]   ;;  %v1269_v21 = vld [vmem:[#allocation4 + $0x24] ss:$8 sps:$4 sm:$0xff]   ;;  %v1272_v27 = vld [vmem:[#allocation4 + $0x34] ss:$8 sps:$4 sm:$0xff]  }
  0x41   :  { %295 = vmatpush1.bf16.msra.mxu1 %v1222_v6  ;;  %786 = vmatprep.subr.bf16.mxu0 %v1266_v18  ;;  %v1534_v23 = vld [vmem:[%s1567_s0] sm:$0xff]   ;;  %v1274_v28 = vld [vmem:[#allocation4 + $0x30] ss:$8 sps:$4 sm:$0xff]   ;;  %v1278_v34 = vld [vmem:[#allocation4 + $0x54] ss:$8 sps:$4 sm:$0xff]  }
  0x42   :  { %296 = vmatprep.subr.bf16.mxu1 %v1223_v7  ;;  %v1271_v24 = vld [vmem:[#allocation4 + $0x20] ss:$8 sps:$4 sm:$0xff]   ;;  %v1275_v30 = vld [vmem:[#allocation4 + $0x44] ss:$8 sps:$4 sm:$0xff]   ;;  %v1280_v36 = vld [vmem:[#allocation4 + $0x50] ss:$8 sps:$4 sm:$0xff]  }
  0x43   :  { %v1277_v32 = vld [vmem:[#allocation4 + $0x40] ss:$8 sps:$4 sm:$0xff]   ;;  %v1250_v35 = vld [vmem:[#allocation2 + $0x6c] ss:$16 sps:$4 sm:$0xff]   ;;  %v1286_v44 = vld [vmem:[#allocation4 + $0x70] ss:$8 sps:$4 sm:$0xff]  }
  0x44   :  { %787 = vmatpush1.bf16.msra.mxu0 %v1268_v19  ;;  %v1248_v37 = vld [vmem:[#allocation2 + $0x68] ss:$16 sps:$4 sm:$0xff]   ;;  %v1281_v38 = vld [vmem:[#allocation4 + $0x64] ss:$8 sps:$4 sm:$0xff]   ;;  %v1284_v42 = vld [vmem:[#allocation4 + $0x74] ss:$8 sps:$4 sm:$0xff]  }
  0x45   :  { %297 = vmatpush1.bf16.msra.mxu1 %v1225_v8  ;;  %788 = vmatprep.subr.bf16.mxu0 %v1269_v21  ;;  %v1253_v39 = vld [vmem:[#allocation2 + $0x8c] ss:$16 sps:$4 sm:$0xff]   ;;  %v1283_v40 = vld [vmem:[#allocation4 + $0x60] ss:$8 sps:$4 sm:$0xff]   ;;  %v1292_v52 = vld [vmem:[#allocation4 + $0x90] ss:$8 sps:$4 sm:$0xff]  }
  0x46   :  { %298 = vmatprep.subr.bf16.mxu1 %v1226_v9  ;;  %v1251_v41 = vld [vmem:[#allocation2 + $0x88] ss:$16 sps:$4 sm:$0xff]   ;;  %v1256_v43 = vld [vmem:[#allocation2 + $0xac] ss:$16 sps:$4 sm:$0xff]   ;;  %v1359_v3 = vld [vmem:[#allocation6 + $0x40] sm:$0xff]  }
  0x47   :  { %v1254_v45 = vld [vmem:[#allocation2 + $0xa8] ss:$16 sps:$4 sm:$0xff]   ;;  %v1287_v46 = vld [vmem:[#allocation4 + $0x84] ss:$8 sps:$4 sm:$0xff]   ;;  %v1290_v50 = vld [vmem:[#allocation4 + $0x94] ss:$8 sps:$4 sm:$0xff]  }
  0x48   :  { %789 = vmatpush1.bf16.msra.mxu0 %v1271_v24  ;;  %v1259_v47 = vld [vmem:[#allocation2 + $0xcc] ss:$16 sps:$4 sm:$0xff]   ;;  %v1289_v48 = vld [vmem:[#allocation4 + $0x80] ss:$8 sps:$4 sm:$0xff]   ;;  %v1298_v57 = vld [vmem:[#allocation4 + $0xb0] ss:$8 sps:$4 sm:$0xff]  }
  0x49   :  { %299 = vmatpush1.bf16.msra.mxu1 %v1228_v10  ;;  %790 = vmatprep.subr.bf16.mxu0 %v1272_v27  ;;  %v1257_v49 = vld [vmem:[#allocation2 + $0xc8] ss:$16 sps:$4 sm:$0xff]   ;;  %v1262_v51 = vld [vmem:[#allocation2 + $0xec] ss:$16 sps:$4 sm:$0xff]   ;;  %v1360_v4 = vld [vmem:[#allocation6] sm:$0xff]  }
  0x4a   :  { %300 = vmatprep.subr.bf16.mxu1 %v1229_v11  ;;  %v1260_v53 = vld [vmem:[#allocation2 + $0xe8] ss:$16 sps:$4 sm:$0xff]   ;;  %v1293_v54 = vld [vmem:[#allocation4 + $0xa4] ss:$8 sps:$4 sm:$0xff]   ;;  %v1296_v56 = vld [vmem:[#allocation4 + $0xb4] ss:$8 sps:$4 sm:$0xff]  }
  0x4b   :  { %v1295_v55 = vld [vmem:[#allocation4 + $0xa0] ss:$8 sps:$4 sm:$0xff]   ;;  %v1299_v58 = vld [vmem:[#allocation4 + $0xc4] ss:$8 sps:$4 sm:$0xff]   ;;  %v1302_v60 = vld [vmem:[#allocation4 + $0xd4] ss:$8 sps:$4 sm:$0xff]  }
  0x4c   :  { %791 = vmatpush1.bf16.msra.mxu0 %v1274_v28  ;;  %v1301_v59 = vld [vmem:[#allocation4 + $0xc0] ss:$8 sps:$4 sm:$0xff]   ;;  %v1304_v61 = vld [vmem:[#allocation4 + $0xd0] ss:$8 sps:$4 sm:$0xff]   ;;  %v1305_v62 = vld [vmem:[#allocation4 + $0xe4] ss:$8 sps:$4 sm:$0xff]  }
  0x4d   :  { %301 = vmatpush1.bf16.msra.mxu1 %v1231_v12  ;;  %792 = vmatprep.subr.bf16.mxu0 %v1275_v30  ;;  %v1307_v63 = vld [vmem:[#allocation4 + $0xe0] ss:$8 sps:$4 sm:$0xff]   ;;  %v1310_v1 = vld [vmem:[#allocation4 + $0xf0] ss:$8 sps:$4 sm:$0xff]   ;;  %v1313_v2 = vld [vmem:[#allocation4 + $0x104] ss:$8 sps:$4 sm:$0xff]  }
  0x4e   :  { %302 = vmatprep.subr.bf16.mxu1 %v1232_v13  ;;  %v1361_v5 = vld [vmem:[#allocation6 + $0x48] sm:$0xff]   ;;  %v1363_v7 = vld [vmem:[#allocation6 + $0x50] sm:$0xff]   ;;  %v1365_v9 = vld [vmem:[#allocation6 + $0x58] sm:$0xff]  }
  0x4f   :  { %v1362_v6 = vld [vmem:[#allocation6 + $0x8] sm:$0xff]   ;;  %v1364_v8 = vld [vmem:[#allocation6 + $0x10] sm:$0xff]   ;;  %v1366_v10 = vld [vmem:[#allocation6 + $0x18] sm:$0xff]  }
  0x50   :  { %793 = vmatpush1.bf16.msra.mxu0 %v1277_v32  ;;  %v1367_v11 = vld [vmem:[#allocation6 + $0x60] sm:$0xff]   ;;  %v1369_v13 = vld [vmem:[#allocation6 + $0x68] sm:$0xff]  }
  0x51   :  { %303 = vmatpush1.bf16.msra.mxu1 %v1234_v14  ;;  %794 = vmatprep.subr.bf16.mxu0 %v1278_v34  ;;  %v1368_v12 = vld [vmem:[#allocation6 + $0x20] sm:$0xff]   ;;  %v104_v14 = vlaneseq }
  0x52   :  { %304 = vmatprep.subr.bf16.mxu1 %v1235_v17  ;;  %v102_v17 = vld [vmem:[%s1569_s2] sm:$0xf] }
  0x53   :  { %v1538_v15 = vshrl.u32 %v104_v14, 7  ;;  %v1352_v14 = vld [vmem:[#allocation4 + $0x1d4] ss:$8 sps:$4 sm:$0xff]  }
  0x54   :  { %795 = vmatpush1.bf16.msra.mxu0 %v1280_v36  ;;  %v1316_v36 = vld [vmem:[#allocation4 + $0x114] ss:$8 sps:$4 sm:$0xff]  }
  0x55   :  { %305 = vmatpush1.bf16.msra.mxu1 %v1237_v20  ;;  %796 = vmatprep.subr.bf16.mxu0 %v1281_v38  ;;  %v106_v16 = vsub.s32 0, %v1538_v15  ;;  %v110_v18 = vsub.s32 1, %v1538_v15  ;;  %v1319_v38 = vld [vmem:[#allocation4 + $0x124] ss:$8 sps:$4 sm:$0xff]  }
  0x56   :  { %333 = vmatprep.subr.bf16.mxu1 %v1241_v22 }
  0x57   :  { %v107_v19 = vrot.slane %v102_v17, %v106_v16  ;;  %v111_v20 = vrot.slane %v102_v17, %v110_v18 }
  0x58   :  { %323 = vmatmul.mubr.bf16.vlgmr.msra.gmra.mrb[0].mxu1 %v1534_v23  ;;  %797 = vmatpush1.bf16.msra.mxu0 %v1283_v40  ;;  %v1322_v40 = vld [vmem:[#allocation4 + $0x134] ss:$8 sps:$4 sm:$0xff]  }
  0x59   :  { %334 = vmatpush1.bf16.msra.mxu1 %v1239_v25  ;;  %365 = vmatprep.mubr.bf16.mxu1 %v1454_v0  ;;  %v1308_v0 = vld [vmem:[#allocation4 + $0xf4] ss:$8 sps:$4 sm:$0xff]  }
  0x5a   :  { %335 = vmatprep.subr.bf16.mxu1 %v1244_v26  ;;  %798 = vmatprep.subr.bf16.mxu0 %v1284_v42  ;;  %v1325_v42 = vld [vmem:[#allocation4 + $0x144] ss:$8 sps:$4 sm:$0xff]  }
  0x5c   :  { %799 = vmatpush1.bf16.msra.mxu0 %v1286_v44  ;;  %v1328_v44 = vld [vmem:[#allocation4 + $0x154] ss:$8 sps:$4 sm:$0xff]  }
  0x5d   :  { %336 = vmatpush1.bf16.msra.mxu1 %v1242_v29  ;;  %800 = vmatprep.subr.bf16.mxu0 %v1287_v46  ;;  %v118_v46 = vsub.s32 3, %v1538_v15 }
  0x5e   :  { %337 = vmatprep.subr.bf16.mxu1 %v1247_v31 }
  0x60   :  { %801 = vmatpush1.bf16.msra.mxu0 %v1289_v48  ;;  %v1331_v48 = vld [vmem:[#allocation4 + $0x164] ss:$8 sps:$4 sm:$0xff]  }
  0x61   :  { %338 = vmatpush1.bf16.msra.mxu1 %v1245_v33  ;;  %802 = vmatprep.subr.bf16.mxu0 %v1290_v50  ;;  %v119_v50 = vrot.slane %v102_v17, %v118_v46 }
  0x62   :  { %339 = vmatprep.subr.bf16.mxu1 %v1250_v35  ;;  %v1311_v35 = vld [vmem:[#allocation4 + $0x100] ss:$8 sps:$4 sm:$0xff]  }
  0x64   :  { %803 = vmatpush1.bf16.msra.mxu0 %v1292_v52 }
  0x65   :  { %340 = vmatpush1.bf16.msra.mxu1 %v1248_v37  ;;  %804 = vmatprep.subr.bf16.mxu0 %v1293_v54  ;;  %v1314_v37 = vld [vmem:[#allocation4 + $0x110] ss:$8 sps:$4 sm:$0xff]  }
  0x66   :  { %341 = vmatprep.subr.bf16.mxu1 %v1253_v39  ;;  %v1317_v39 = vld [vmem:[#allocation4 + $0x120] ss:$8 sps:$4 sm:$0xff]  }
  0x68   :  { %805 = vmatpush1.bf16.msra.mxu0 %v1295_v55 }
  0x69   :  { %342 = vmatpush1.bf16.msra.mxu1 %v1251_v41  ;;  %806 = vmatprep.subr.bf16.mxu0 %v1296_v56  ;;  %v1320_v41 = vld [vmem:[#allocation4 + $0x130] ss:$8 sps:$4 sm:$0xff]  }
  0x6a   :  { %343 = vmatprep.subr.bf16.mxu1 %v1256_v43  ;;  %v1323_v43 = vld [vmem:[#allocation4 + $0x140] ss:$8 sps:$4 sm:$0xff]  }
  0x6c   :  { %807 = vmatpush1.bf16.msra.mxu0 %v1298_v57 }
  0x6d   :  { %344 = vmatpush1.bf16.msra.mxu1 %v1254_v45  ;;  %808 = vmatprep.subr.bf16.mxu0 %v1299_v58  ;;  %v114_v45 = vsub.s32 2, %v1538_v15  ;;  %v1157_v15 = vld [vmem:[%s1573_s6] ss:$0 sm:$0xff] }
  0x6e   :  { %345 = vmatprep.subr.bf16.mxu1 %v1259_v47  ;;  %v1326_v47 = vld [vmem:[#allocation4 + $0x150] ss:$8 sps:$4 sm:$0xff]  }
  0x70   :  { %809 = vmatpush1.bf16.msra.mxu0 %v1301_v59 }
  0x71   :  { %346 = vmatpush1.bf16.msra.mxu1 %v1257_v49  ;;  %810 = vmatprep.subr.bf16.mxu0 %v1302_v60  ;;  %v115_v49 = vrot.slane %v102_v17, %v114_v45  ;;  %v1350_v17 = vld [vmem:[#allocation4 + $0x1d0] ss:$8 sps:$4 sm:$0xff]  }
  0x72   :  { %347 = vmatprep.subr.bf16.mxu1 %v1262_v51  ;;  %v1329_v51 = vld [vmem:[#allocation4 + $0x160] ss:$8 sps:$4 sm:$0xff]  }
  0x74   :  { %811 = vmatpush1.bf16.msra.mxu0 %v1304_v61  ;;  %v1332_v61 = vld [vmem:[#allocation4 + $0x170] ss:$8 sps:$4 sm:$0xff]  }
  0x75   :  { %348 = vmatpush1.bf16.msra.mxu1 %v1260_v53  ;;  %812 = vmatprep.subr.bf16.mxu0 %v1305_v62  ;;  %v1334_v53 = vld [vmem:[#allocation4 + $0x174] ss:$8 sps:$4 sm:$0xff]  }
  0x76   :  { %1174 = vmatprep.subr.bf16.mxu1 %v1359_v3 }
  0x78   :  { %366 = vmatmul.mubr.bf16.vlgmr.msra.gmra.mrb[4].mxu1 %v1534_v23  ;;  %813 = vmatpush1.bf16.msra.mxu0 %v1307_v63 }
  0x79   :  { %814 = vmatprep.subr.bf16.mxu0 %v1308_v0  ;;  %1175 = vmatpush3.bf16.msra.mxu1 %v1360_v4  ;;  %v1337_v0 = vld [vmem:[#allocation4 + $0x184] ss:$8 sps:$4 sm:$0xff]   ;;  %v1335_v4 = vld [vmem:[#allocation4 + $0x180] ss:$8 sps:$4 sm:$0xff]  }
  0x7a   :  { %1176 = vmatprep.subr.bf16.mxu1 %v1361_v5 }
  0x7c   :  { %815 = vmatpush1.bf16.msra.mxu0 %v1310_v1 }
  0x7d   :  { %827 = vmatprep.subr.bf16.mxu0 %v1313_v2  ;;  %1177 = vmatpush3.bf16.msra.mxu1 %v1362_v6  ;;  %v1340_v6 = vld [vmem:[#allocation4 + $0x194] ss:$8 sps:$4 sm:$0xff]  }
  0x7e   :  { %1178 = vmatprep.subr.bf16.mxu1 %v1363_v7  ;;  %v1338_v7 = vld [vmem:[#allocation4 + $0x190] ss:$8 sps:$4 sm:$0xff]  }
  0x81   :  { %1179 = vmatpush3.bf16.msra.mxu1 %v1364_v8  ;;  %v1343_v8 = vld [vmem:[#allocation4 + $0x1a4] ss:$8 sps:$4 sm:$0xff]  }
  0x82   :  { %1180 = vmatprep.subr.bf16.mxu1 %v1365_v9  ;;  %v1341_v9 = vld [vmem:[#allocation4 + $0x1a0] ss:$8 sps:$4 sm:$0xff]  }
  0x85   :  { %1181 = vmatpush3.bf16.msra.mxu1 %v1366_v10  ;;  %v1346_v10 = vld [vmem:[#allocation4 + $0x1b4] ss:$8 sps:$4 sm:$0xff]  }
  0x86   :  { %1182 = vmatprep.subr.bf16.mxu1 %v1367_v11  ;;  %v1344_v11 = vld [vmem:[#allocation4 + $0x1b0] ss:$8 sps:$4 sm:$0xff]  }
  0x89   :  { %1183 = vmatpush3.bf16.msra.mxu1 %v1368_v12  ;;  %v1349_v12 = vld [vmem:[#allocation4 + $0x1c4] ss:$8 sps:$4 sm:$0xff]  }
  0x8a   :  { %1184 = vmatprep.subr.bf16.mxu1 %v1369_v13  ;;  %v1347_v13 = vld [vmem:[#allocation4 + $0x1c0] ss:$8 sps:$4 sm:$0xff]  }
 0x12b   :  { %v324_v21 = vpop.f32.mrb[0].mxu1 }
 0x12c   :  { %v325_v22 = vadd.f32 %v324_v21, %v107_v19  ;;  %v326_v23 = vpop.f32.mrb[1].mxu1  ;;  %v1358_v21 = vld [vmem:[#allocation4 + $0x1f4] ss:$8 sps:$4 sm:$0xff]  }
 0x12d   :  { %v327_v24 = vadd.f32 %v326_v23, %v111_v20  ;;  %v328_v25 = vpop.f32.mrb[2].mxu1  ;;  %v1370_v23 = vld [vmem:[#allocation6 + $0x28] sm:$0xff]  }
 0x12e   :  { %v329_v26 = vadd.f32 %v328_v25, %v107_v19  ;;  %v330_v27 = vpop.f32.mrb[3].mxu1  ;;  %v376_v29 = vmax.f32 %v325_v22, 0.0  ;;  %v1355_v19 = vld [vmem:[#allocation4 + $0x1e4] ss:$8 sps:$4 sm:$0xff]   ;;  %v1356_v22 = vld [vmem:[#allocation4 + $0x1f0] ss:$8 sps:$4 sm:$0xff]   ;;  %1185 = vmatpush3.bf16.msra.mxu1 %v1370_v23 }
 0x12f   :  { %v331_v28 = vadd.f32 %v330_v27, %v111_v20  ;;  %v377_v31 = vmax.f32 %v327_v24, 0.0  ;;  %v1353_v20 = vld [vmem:[#allocation4 + $0x1e0] ss:$8 sps:$4 sm:$0xff]   ;;  %v1371_v24 = vld [vmem:[#allocation6 + $0x70] sm:$0xff]   ;;  %v1374_v27 = vld [vmem:[#allocation6 + $0x38] sm:$0xff]  }
 0x130   :  { %v380_v30 = vmax.f32 %v329_v26, 0.0  ;;  %v1372_v25 = vld [vmem:[#allocation6 + $0x30] sm:$0xff]   ;;  %1186 = vmatprep.subr.bf16.mxu1 %v1371_v24  ;;  %v1373_v26 = vld [vmem:[#allocation6 + $0x78] sm:$0xff]  }
 0x131   :  { %v381_v32 = vmax.f32 %v331_v28, 0.0  ;;  %v452_v28 = vld [vmem:[%s1571_s4] sm:$0x3] }
 0x132   :  { %v384_v33 = vpack.c.bf16 %v380_v30, %v376_v29  ;;  %1187 = vmatpush3.bf16.msra.mxu1 %v1372_v25  ;;  %v457_v29 = vrot.slane %v452_v28, %v106_v16  ;;  %v461_v30 = vrot.slane %v452_v28, %v110_v18 }
 0x133   :  { %v385_v34 = vpack.c.bf16 %v381_v32, %v377_v31  ;;  %1188 = vmatprep.subr.bf16.mxu1 %v1373_v26 }
 0x135   :  { %816 = vmatprep.mubr.bf16.mxu0 %v385_v34 }
 0x136   :  { %817 = vmatmul.mubr.bf16.vlgmr.msra.gmra.mrb[0].mxu0 %v384_v33  ;;  %1189 = vmatpush3.bf16.msra.mxu1 %v1374_v27 }
 0x137   :  { %828 = vmatpush1.bf16.msra.mxu0 %v1311_v35 }
 0x138   :  { %829 = vmatprep.subr.bf16.mxu0 %v1316_v36 }
 0x13b   :  { %830 = vmatpush1.bf16.msra.mxu0 %v1314_v37 }
 0x13c   :  { %831 = vmatprep.subr.bf16.mxu0 %v1319_v38 }
 0x13f   :  { %832 = vmatpush1.bf16.msra.mxu0 %v1317_v39 }
 0x140   :  { %833 = vmatprep.subr.bf16.mxu0 %v1322_v40 }
 0x143   :  { %834 = vmatpush1.bf16.msra.mxu0 %v1320_v41 }
 0x144   :  { %835 = vmatprep.subr.bf16.mxu0 %v1325_v42 }
 0x147   :  { %836 = vmatpush1.bf16.msra.mxu0 %v1323_v43 }
 0x148   :  { %837 = vmatprep.subr.bf16.mxu0 %v1328_v44 }
 0x14b   :  { %838 = vmatpush1.bf16.msra.mxu0 %v1326_v47  ;;  %v367_v52 = vpop.f32.mrb[4].mxu1 }
 0x14c   :  { %839 = vmatprep.subr.bf16.mxu0 %v1331_v48  ;;  %v368_v54 = vadd.f32 %v367_v52, %v115_v49  ;;  %v369_v55 = vpop.f32.mrb[5].mxu1 }
 0x14d   :  { %v370_v56 = vadd.f32 %v369_v55, %v119_v50  ;;  %v371_v57 = vpop.f32.mrb[6].mxu1 }
 0x14e   :  { %v378_v58 = vmax.f32 %v368_v54, 0.0  ;;  %v372_v59 = vadd.f32 %v371_v57, %v115_v49  ;;  %v373_v60 = vpop.f32.mrb[7].mxu1 }
 0x14f   :  { %840 = vmatpush1.bf16.msra.mxu0 %v1329_v51  ;;  %v379_v62 = vmax.f32 %v370_v56, 0.0  ;;  %v374_v63 = vadd.f32 %v373_v60, %v119_v50 }
 0x150   :  { %841 = vmatprep.subr.bf16.mxu0 %v1334_v53  ;;  %v382_v1 = vmax.f32 %v372_v59, 0.0 }
 0x151   :  { %v383_v2 = vmax.f32 %v374_v63, 0.0 }
 0x152   :  { %v386_v3 = vpack.c.bf16 %v382_v1, %v378_v58 }
 0x153   :  { %842 = vmatpush1.bf16.msra.mxu0 %v1332_v61  ;;  %v387_v5 = vpack.c.bf16 %v383_v2, %v379_v62 }
 0x154   :  { %843 = vmatprep.subr.bf16.mxu0 %v1337_v0 }
 0x155   :  { %859 = vmatprep.mubr.bf16.mxu0 %v387_v5 }
 0x157   :  { %844 = vmatpush1.bf16.msra.mxu0 %v1335_v4 }
 0x158   :  { %845 = vmatprep.subr.bf16.mxu0 %v1340_v6 }
 0x15b   :  { %846 = vmatpush1.bf16.msra.mxu0 %v1338_v7 }
 0x15c   :  { %847 = vmatprep.subr.bf16.mxu0 %v1343_v8 }
 0x15f   :  { %848 = vmatpush1.bf16.msra.mxu0 %v1341_v9 }
 0x160   :  { %849 = vmatprep.subr.bf16.mxu0 %v1346_v10 }
 0x163   :  { %850 = vmatpush1.bf16.msra.mxu0 %v1344_v11 }
 0x164   :  { %851 = vmatprep.subr.bf16.mxu0 %v1349_v12 }
 0x167   :  { %852 = vmatpush1.bf16.msra.mxu0 %v1347_v13 }
 0x168   :  { %853 = vmatprep.subr.bf16.mxu0 %v1352_v14 }
 0x16b   :  { %854 = vmatpush1.bf16.msra.mxu0 %v1350_v17 }
 0x16c   :  { %855 = vmatprep.subr.bf16.mxu0 %v1355_v19 }
 0x16f   :  { %856 = vmatpush1.bf16.msra.mxu0 %v1353_v20 }
 0x170   :  { %857 = vmatprep.subr.bf16.mxu0 %v1358_v21 }
 0x173   :  { %858 = vmatpush1.bf16.msra.mxu0 %v1356_v22 }
 0x176   :  { %860 = vmatmul.mubr.bf16.vlgmr.msra.gmra.mrb[0].mxu0 %v386_v3 }
 0x249   :  { %v861_v31 = vpop.f32.mrb[0].mxu0 }
 0x24a   :  { %v1196_v32 = vadd.f32 %v861_v31, %v457_v29  ;;  %v863_v33 = vpop.f32.mrb[1].mxu0 }
 0x24b   :  { %v1197_v34 = vadd.f32 %v863_v33, %v461_v30  ;;  %v865_v35 = vpop.f32.mrb[2].mxu0 }
 0x24c   :  { %v1198_v36 = vadd.f32 %v865_v35, %v457_v29  ;;  %v867_v37 = vpop.f32.mrb[3].mxu0  ;;  %v870_v39 = vmax.f32 %v1196_v32, 0.0 }
 0x24d   :  { %v1199_v38 = vadd.f32 %v867_v37, %v461_v30  ;;  %v871_v41 = vmax.f32 %v1197_v34, 0.0 }
 0x24e   :  { %v872_v40 = vmax.f32 %v1198_v36, 0.0 }
 0x24f   :  { %v873_v42 = vmax.f32 %v1199_v38, 0.0 }
 0x250   :  { %v874_v43 = vpack.c.bf16 %v872_v40, %v870_v39 }
 0x251   :  { %v875_v44 = vpack.c.bf16 %v873_v42, %v871_v41 }
 0x253   :  { %1043 = vmatprep.mubr.bf16.mxu1 %v875_v44 }
 0x254   :  { %1044 = vmatmul.mubr.bf16.vlgmr.msra.gmra.mrb[8].mxu1 %v874_v43 }
 0x327   :  { %v1190_v16 = vpop.f32.mrb[8].mxu1 }
 0x328   :  { %v1191_v18 = vpop.f32.mrb[9].mxu1 }
 0x329   :  { %v1192_v45 = vadd.f32 %v1191_v18, %v1190_v16  ;;  %v1193_v46 = vpop.f32.mrb[10].mxu1 }
 0x32a   :  { %v1194_v47 = vpop.f32.mrb[11].mxu1 }
 0x32b   :  { %v1046_v48 = vadd.f32 %v1192_v45, %v1157_v15  ;;  %v1195_v49 = vadd.f32 %v1194_v47, %v1193_v46 }
 0x32d   :  { %1052 = vst [vmem:[%s1574_s7] sm:$0xff] %v1046_v48  ;;  %v1049_v50 = vadd.f32 %v1195_v49, %v1157_v15 }
 0x32f   :  { %1053 = vst [vmem:[%s1574_s7 + $0x8] sm:$0xff] %v1049_v50 }
 0x330   :  { %1058 = vsyncpa [#allocation3], 1 }
 0x331   :  { %1059 = vsyncpa [#allocation5], 1 }

</bundles_post_ra>
